<compile_context>
chip_gen: v5e
topology: v5e:2x2
jax: 0.10.0
libtpu: 0.0.40
codegen_flags: <defaults>
</compile_context>

<pallas_src>
import functools

import jax
import jax.numpy as jnp
from jax.experimental import pallas as pl
from jax.experimental.pallas import tpu as pltpu

# ---------------- configuration (hyperParaModel) ----------------
WL = 16            # wl          (LayerNorm / channel dim, C)
WT = 8             # wtTotalNum  (number of patches, P)
P_IN = 4           # p
EMB = WT           # embeddingD (must equal wtTotalNum for shapes to chain)
HIDDEN = 32        # hiddenDim
N_OUT = 4          # n
DEPTH = 2          # depth
TUO = 1.0          # Embed tuo
LN_EPS = 1e-5      # nn.LayerNorm default eps

IN_W = WL * WT * P_IN        # 512  flattened input width
STATE_W = WT * WL            # 128  flattened mixer state width (p*C + c)
CH_HID_W = WT * HIDDEN       # 256  flattened channel-mix hidden width
HEAD_W = WL * 2              # 32   head hidden width
OUT_W = N_OUT * 3            # 12   head output width (logical)
OUT_PAD = 128                # lane-dense padded head output width
PACK_COLS = 256              # lane width of the packed parameter slabs

assert WL == 16 and STATE_W == 128, "roll-tree LN assumes 8 groups of 16 lanes"


def _round_up(n, m):
    return ((n + m - 1) // m) * m


# ---------------- packed-parameter layouts (static) ----------------
def _build_w_layout():
    layout, off = {}, 0

    def add(name, r, c):
        nonlocal off
        layout[name] = (off, r, c)
        off += r

    add("fc", IN_W, STATE_W)
    for d in range(DEPTH):
        add(f"t1{d}", STATE_W, STATE_W)
        add(f"t2{d}", STATE_W, STATE_W)
        add(f"c1{d}", STATE_W, CH_HID_W)
        add(f"c2{d}", CH_HID_W, STATE_W)
    add("h1", STATE_W, HEAD_W)          # final-LN-affine o patch-mean o hw1
    add("h2", HEAD_W, HEAD_W)
    add("h3", HEAD_W, OUT_PAD)          # zero-padded to a lane-dense 128 cols
    return layout, off


def _build_b_layout():
    layout, row = {}, 0

    def add(name, c):
        nonlocal row
        layout[name] = (row, c)
        row += 8                        # 8-row stride keeps slices sublane aligned

    add("fc", STATE_W)
    for d in range(DEPTH):
        add(f"t1{d}", STATE_W)
        add(f"t2{d}", STATE_W)
        add(f"c1{d}", CH_HID_W)
        add(f"c2{d}", STATE_W)
    add("h1", HEAD_W)
    add("h2", HEAD_W)
    add("h3", OUT_PAD)
    return layout, row


W_LAYOUT, W_ROWS = _build_w_layout()
B_LAYOUT, B_ROWS = _build_b_layout()


# ---------------- roll-convention probe ----------------
@functools.lru_cache(maxsize=1)
def _roll_is_numpy_convention():
    """True if pltpu.roll(x, s)[i] == x[(i - s) % n] (np.roll convention)."""
    def probe(x_ref, o_ref):
        o_ref[...] = pltpu.roll(x_ref[...], 1, axis=1)

    x = jnp.tile(jnp.arange(128, dtype=jnp.float32)[None, :], (8, 1))
    out = pl.pallas_call(
        probe, out_shape=jax.ShapeDtypeStruct((8, 128), jnp.float32))(x)
    return bool(jax.device_get(out)[0, 1] == 0.0)


# ---------------- kernel ----------------
def mixer_kernel(x_ref, w_ref, b_ref, out_ref, *, gather_sign):
    f32 = jnp.float32

    def wmat(name):
        off, r, c = W_LAYOUT[name]
        return w_ref[off:off + r, :c]          # bf16 tile

    def bias(name):
        row, c = B_LAYOUT[name]
        return b_ref[row:row + 1, :c]          # f32 row

    def dotb(a, name):
        # bf16 x bf16 -> f32 on the MXU
        return jnp.dot(a.astype(jnp.bfloat16), wmat(name),
                       preferred_element_type=jnp.float32)

    # 0/1 mask of LN-group-start lanes (lane % 16 == 0), shape (1, 128)
    lane = jax.lax.broadcasted_iota(jnp.int32, (1, STATE_W), 1)
    m0 = ((lane & (WL - 1)) == 0).astype(f32)

    def group_sum(v):
        # Per-16-lane-group sum broadcast to every lane of its group,
        # computed entirely with XLU lane rotations + VPU adds (no MXU).
        # Phase 1: lane j accumulates lanes j..j+15  -> group-start lanes hold
        #          their group's sum (windows never cross a group boundary).
        y = v
        for s in (1, 2, 4, 8):
            y = y + pltpu.roll(y, (gather_sign * s) % STATE_W, axis=1)
        # Phase 2: keep only group-start lanes, then spread each group's sum
        #          forward over the following 15 lanes (its own group).
        z = y * m0
        for s in (1, 2, 4, 8):
            z = z + pltpu.roll(z, (-gather_sign * s) % STATE_W, axis=1)
        return z

    def group_ln(v):
        # LayerNorm over the 16 channels of each patch group (f32 throughout).
        mu = group_sum(v) * (1.0 / WL)
        dv = v - mu
        var = group_sum(dv * dv) * (1.0 / WL)
        return dv * jax.lax.rsqrt(var + LN_EPS)

    x = x_ref[...]                                        # (BLK, 512) bf16
    # Embed (softmax weight folded into W) + FC + 'b c p -> b p c' (folded).
    s = dotb(x, "fc") + bias("fc")                        # (BLK, 128) f32

    for d in range(DEPTH):
        # token mixing (LN affine folded into t1)
        xn = group_ln(s)
        h = jnp.maximum(dotb(xn, f"t1{d}") + bias(f"t1{d}"), 0.0)
        s = s + dotb(h, f"t2{d}") + bias(f"t2{d}")
        # channel mixing (LN affine folded into c1)
        xn = group_ln(s)
        h = jnp.maximum(dotb(xn, f"c1{d}") + bias(f"c1{d}"), 0.0)
        s = s + dotb(h, f"c2{d}") + bias(f"c2{d}")

    # head: final LN + mean over patches + MLP (first two stages folded in h1)
    xn = group_ln(s)
    z = jnp.maximum(dotb(xn, "h1") + bias("h1"), 0.0)     # (BLK, 32)
    z = jnp.maximum(dotb(z, "h2") + bias("h2"), 0.0)      # (BLK, 32)
    out_ref[...] = dotb(z, "h3") + bias("h3")             # (BLK, 128), 12 real


# ---------------- trace-time parameter packing ----------------
def _pack_params(p):
    f32 = jnp.float32
    eye_c = jnp.eye(WL, dtype=f32)
    eye_p = jnp.eye(WT, dtype=f32)

    mats, vecs = {}, {}

    # Embed softmax (batch independent) folded into the FC weight; the FC is
    # turned into a block-diagonal operator whose columns are permuted so the
    # output comes out directly in the p-major (p*C + c) state layout.
    w_soft = jax.nn.softmax(p["emb_w"].reshape(-1) / TUO)              # (512,)
    fc_blk = jnp.kron(eye_c, p["fc_w"])                                # (512, C*T)
    fc_blk = fc_blk.reshape(IN_W, WL, WT).transpose(0, 2, 1).reshape(IN_W, STATE_W)
    mats["fc"] = w_soft[:, None] * fc_blk
    vecs["fc"] = jnp.repeat(p["fc_b"].reshape(-1), WL)                 # (128,)

    for d in range(DEPTH):
        g1 = jnp.tile(p["ln1g"][d].reshape(-1), WT)
        b1 = jnp.tile(p["ln1b"][d].reshape(-1), WT)
        wt1 = jnp.kron(p["tw1"][d], eye_c)                             # (128, 128)
        bt1 = jnp.repeat(p["tb1"][d].reshape(-1), WL)
        wt2 = jnp.kron(p["tw2"][d], eye_c)                             # (128, 128)
        bt2 = jnp.repeat(p["tb2"][d].reshape(-1), WL)
        mats[f"t1{d}"] = g1[:, None] * wt1
        vecs[f"t1{d}"] = b1 @ wt1 + bt1
        mats[f"t2{d}"] = wt2
        vecs[f"t2{d}"] = bt2

        g2 = jnp.tile(p["ln2g"][d].reshape(-1), WT)
        b2 = jnp.tile(p["ln2b"][d].reshape(-1), WT)
        wc1 = jnp.kron(eye_p, p["cw1"][d])                             # (128, 256)
        bc1 = jnp.tile(p["cb1"][d].reshape(-1), WT)
        wc2 = jnp.kron(eye_p, p["cw2"][d])                             # (256, 128)
        bc2 = jnp.tile(p["cb2"][d].reshape(-1), WT)
        mats[f"c1{d}"] = g2[:, None] * wc1
        vecs[f"c1{d}"] = b2 @ wc1 + bc1
        mats[f"c2{d}"] = wc2
        vecs[f"c2{d}"] = bc2

    # final LN affine + mean-over-patches + first head linear, folded together
    gf = jnp.tile(p["lnfg"].reshape(-1), WT)
    bf = jnp.tile(p["lnfb"].reshape(-1), WT)
    mpool = jnp.kron(jnp.full((WT, 1), 1.0 / WT, f32), eye_c)          # (128, 16)
    mats["h1"] = (gf[:, None] * mpool) @ p["hw1"]                      # (128, 32)
    vecs["h1"] = (bf @ mpool) @ p["hw1"] + p["hb1"].reshape(-1)
    mats["h2"] = p["hw2"]
    vecs["h2"] = p["hb2"].reshape(-1)
    # head output padded to a lane-dense 128-wide block
    mats["h3"] = jnp.zeros((HEAD_W, OUT_PAD), f32).at[:, :OUT_W].set(p["hw3"])
    vecs["h3"] = jnp.zeros((OUT_PAD,), f32).at[:OUT_W].set(p["hb3"].reshape(-1))

    wbig = jnp.zeros((W_ROWS, PACK_COLS), f32)
    for name, (off, r, c) in W_LAYOUT.items():
        wbig = wbig.at[off:off + r, :c].set(mats[name])
    bvec = jnp.zeros((B_ROWS, PACK_COLS), f32)
    for name, (row, c) in B_LAYOUT.items():
        bvec = bvec.at[row, :c].set(vecs[name])
    # weights in bf16 (MXU-native); biases stay f32 (added to f32 dot results)
    return wbig.astype(jnp.bfloat16), bvec


# ---------------- wrapper ----------------
def _clamp_blk(B, blk):
    G = 16                                    # bf16-friendly sublane granularity
    Bg = _round_up(max(B, 1), G)
    eff = max(G, _round_up(min(blk, Bg), G))
    # v7x has 2 TensorCores: keep the parallel grid at >= 2 steps when possible.
    if Bg >= 2 * G:
        eff = min(eff, _round_up(Bg // 2, G))
    return eff


@functools.partial(jax.jit, static_argnames=("blk", "gather_sign"))
def _mixer_fwd(x, params, blk, gather_sign):
    B = x.shape[0]
    xf = x.reshape(B, IN_W).astype(jnp.bfloat16)   # matches torch .view(bs, -1)

    eff = _clamp_blk(B, blk)
    Bp = _round_up(B, eff)
    if Bp != B:
        xf = jnp.pad(xf, ((0, Bp - B), (0, 0)))

    wbig, bvec = _pack_params(params)

    out = pl.pallas_call(
        functools.partial(mixer_kernel, gather_sign=gather_sign),
        grid=(Bp // eff,),
        in_specs=[
            pl.BlockSpec((eff, IN_W), lambda i: (i, 0)),
            pl.BlockSpec(wbig.shape, lambda i: (0, 0)),
            pl.BlockSpec(bvec.shape, lambda i: (0, 0)),
        ],
        out_specs=pl.BlockSpec((eff, OUT_PAD), lambda i: (i, 0)),
        out_shape=jax.ShapeDtypeStruct((Bp, OUT_PAD), jnp.float32),
        compiler_params=pltpu.CompilerParams(
            dimension_semantics=("parallel",)),
    )(xf, wbig, bvec)

    out = out[:B, :OUT_W].reshape(B, N_OUT, 3)
    w = out[:, :, 0]
    alpha = jax.nn.relu(out[:, :, 1]) + 1.0
    beta = jax.nn.relu(out[:, :, 2]) + 1.0
    return w, alpha, beta


def mlp_mixer_reg_beta(x, params, blk=512):
    """x: (B, wl, wt, p) float32 -> (w, alpha, beta), each (B, n)."""
    gather_sign = -1 if _roll_is_numpy_convention() else 1
    return _mixer_fwd(x, params, blk=blk, gather_sign=gather_sign)


# ---------------- parameters & pure-JAX reference ----------------
def init_params(key):
    keys = iter(jax.random.split(key, 32))

    def lin(in_d, out_d):
        w = jax.random.normal(next(keys), (in_d, out_d), jnp.float32) * 0.1
        b = jax.random.normal(next(keys), (1, out_d), jnp.float32) * 0.01
        return w, b

    p = {}
    # Embed.weight = torch.ones(p*wt*wl), reshaped to (wl, wt*p)
    p["emb_w"] = jnp.ones((WL, WT * P_IN), jnp.float32)
    p["fc_w"], p["fc_b"] = lin(P_IN * WT, WT)

    ln1g, ln1b, tw1, tb1, tw2, tb2 = [], [], [], [], [], []
    ln2g, ln2b, cw1, cb1, cw2, cb2 = [], [], [], [], [], []
    for _ in range(DEPTH):
        ln1g.append(jnp.ones((1, WL), jnp.float32))
        ln1b.append(jnp.zeros((1, WL), jnp.float32))
        w, b = lin(EMB, WT); tw1.append(w); tb1.append(b)
        w, b = lin(WT, EMB); tw2.append(w); tb2.append(b)
        ln2g.append(jnp.ones((1, WL), jnp.float32))
        ln2b.append(jnp.zeros((1, WL), jnp.float32))
        w, b = lin(WL, HIDDEN); cw1.append(w); cb1.append(b)
        w, b = lin(HIDDEN, WL); cw2.append(w); cb2.append(b)

    for name, lst in [("ln1g", ln1g), ("ln1b", ln1b), ("tw1", tw1), ("tb1", tb1),
                      ("tw2", tw2), ("tb2", tb2), ("ln2g", ln2g), ("ln2b", ln2b),
                      ("cw1", cw1), ("cb1", cb1), ("cw2", cw2), ("cb2", cb2)]:
        p[name] = jnp.stack(lst)

    p["lnfg"] = jnp.ones((1, WL), jnp.float32)
    p["lnfb"] = jnp.zeros((1, WL), jnp.float32)
    p["hw1"], p["hb1"] = lin(WL, WL * 2)
    p["hw2"], p["hb2"] = lin(WL * 2, WL * 2)
    p["hw3"], p["hb3"] = lin(WL * 2, N_OUT * 3)
    return p


def reference(x, p):
    """Pure-JAX f32 reference mirroring the PyTorch forward."""
    B = x.shape[0]
    xf = x.reshape(B, -1)
    w = jax.nn.softmax(p["emb_w"].reshape(-1) / TUO)
    xf = xf * w
    h = xf.reshape(B, WL, WT * P_IN) @ p["fc_w"] + p["fc_b"][0]     # (B, wl, wt)
    h = jnp.transpose(h, (0, 2, 1))                                 # (B, wt, wl)

    def ln(z, g, b):
        mu = z.mean(-1, keepdims=True)
        var = ((z - mu) ** 2).mean(-1, keepdims=True)
        return (z - mu) / jnp.sqrt(var + LN_EPS) * g + b

    for d in range(DEPTH):
        y = ln(h, p["ln1g"][d, 0], p["ln1b"][d, 0])
        yt = jnp.transpose(y, (0, 2, 1))
        t = jax.nn.relu(yt @ p["tw1"][d] + p["tb1"][d, 0]) @ p["tw2"][d] + p["tb2"][d, 0]
        h = h + jnp.transpose(t, (0, 2, 1))
        y = ln(h, p["ln2g"][d, 0], p["ln2b"][d, 0])
        c = jax.nn.relu(y @ p["cw1"][d] + p["cb1"][d, 0]) @ p["cw2"][d] + p["cb2"][d, 0]
        h = h + c

    y = ln(h, p["lnfg"][0], p["lnfb"][0])
    m = y.mean(axis=1)
    z = jax.nn.relu(m @ p["hw1"] + p["hb1"][0])
    z = jax.nn.relu(z @ p["hw2"] + p["hb2"][0])
    z = (z @ p["hw3"] + p["hb3"][0]).reshape(B, N_OUT, 3)
    return z[:, :, 0], jax.nn.relu(z[:, :, 1]) + 1.0, jax.nn.relu(z[:, :, 2]) + 1.0


if __name__ == "__main__":
    key = jax.random.PRNGKey(0)
    kx, kp = jax.random.split(key)
    B = 64
    x = jax.random.normal(kx, (B, WL, WT, P_IN), jnp.float32)   # (B, wl, wt, p)
    params = init_params(kp)

    # multi-step grid path (blk clamp -> 2 grid steps of 32 samples)
    w, alpha, beta = mlp_mixer_reg_beta(x, params)
    jax.block_until_ready((w, alpha, beta))

    # bf16 matmul operands -> compare against the f32 reference at bf16-level
    # tolerance; structural errors would be orders of magnitude larger.
    TOL = dict(atol=5e-2, rtol=5e-2)
    w_r, a_r, b_r = reference(x, params)
    assert w.shape == (B, N_OUT) and alpha.shape == (B, N_OUT) and beta.shape == (B, N_OUT)
    assert jnp.allclose(w, w_r, **TOL)
    assert jnp.allclose(alpha, a_r, **TOL)
    assert jnp.allclose(beta, b_r, **TOL)

    # explicit small blk (exercises the multi-step path with a user-given blk)
    w1, a1, b1 = mlp_mixer_reg_beta(x, params, blk=32)
    jax.block_until_ready((w1, a1, b1))
    assert jnp.allclose(w1, w_r, **TOL)

    # padded / single-step path (B=2 padded up to one 16-row block)
    w2, a2, b2 = mlp_mixer_reg_beta(x[:2], params, blk=128)
    jax.block_until_ready((w2, a2, b2))
    assert jnp.allclose(w2, w_r[:2], **TOL)
    assert jnp.allclose(a2, a_r[:2], **TOL)
    assert jnp.allclose(b2, b_r[:2], **TOL)

    print("KERNEL_OK")
</pallas_src>

<mosaic_0001>
module attributes {stable_mosaic.version = 11 : i64} {
  func.func @probe(%arg0: memref<8x128xf32, #tpu.memory_space<vmem>>, %arg1: memref<8x128xf32, #tpu.memory_space<vmem>>) attributes {dimension_semantics = [], scalar_prefetch = 0 : i64, scratch_operands = 0 : i64, tpu.core_type = #tpu.core_type<tc>} {
    %c0 = arith.constant 0 : index
    %c0_0 = arith.constant 0 : index
    %0 = vector.load %arg0[%c0, %c0_0] : memref<8x128xf32, #tpu.memory_space<vmem>>, vector<8x128xf32>
    %c1_i32 = arith.constant 1 : i32
    %1 = tpu.dynamic_rotate %0 by %c1_i32 dim 1 : vector<8x128xf32>, i32 -> vector<8x128xf32>
    %c0_1 = arith.constant 0 : index
    %c0_2 = arith.constant 0 : index
    %2 = vector.load %arg1[%c0_1, %c0_2] : memref<8x128xf32, #tpu.memory_space<vmem>>, vector<8x128xf32>
    tpu.vector_store %arg1[%c0_1, %c0_2], %1 {strides = array<i32>} : memref<8x128xf32, #tpu.memory_space<vmem>>, vector<8x128xf32>,
    return
  }
}

</mosaic_0001>

<bundles_post_ra>
// kernel: tpu_custom_call.1
= control target key start
LH: loop header
LB: loop body
LE: loop exit
PB: predicated region body
PF: predicated region fallthrough
CT: control target
= control target key end

     0   :  { %6 = vsyncpa [#allocation3], 0  ;;  %s118_s0 = inlined_call_operand.hbm [shape: f32[8,128], index: 0, kind: input, shape index: {}]   ;;  %s119_s1 = inlined_call_operand.hbm [shape: f32[8,128], index: 1, kind: output, shape index: {}]  }
   0x1   :  { %7 = vsyncpa [#allocation4], 0  ;;  %s13_s8 = sshll.u32 %s118_s0, 4  ;;  %s99_s9 = smov [#allocation2]   ;;  %s14_s8 = int_to_ptr.hbm [resolvable:$true] %s13_s8 }
   0x2   :  { %s15_s10 = sshll.u32 %s99_s9, 4  ;;  %s16_s10 = int_to_ptr.vmem [resolvable:$true] %s15_s10 }
   0x3   :  { %18 = dma.hbm_to_vmem [thread:$0]  %s14_s8, 128, %s16_s10, [#allocation3]  }
   0x4   :  { %95 = dma.done.wait [#allocation3], 128  }
   0x5   :  { %96 = vsyncadd [#allocation3], 4294967168  ;;  %v23_v0 = vld [vmem:[#allocation2] sm:$0xff]  ;;  %s100_s11 = smov 1   ;;  %s101_s12 = smov [#allocation5]  }
   0x6   :  { %24 = vrot.lane.b32.xlu0 %v23_v0, %s100_s11  ;;  %s32_s13 = sshll.u32 %s101_s12, 4  ;;  %s34_s16 = sshll.u32 %s119_s1, 4  ;;  %s33_s13 = int_to_ptr.vmem [resolvable:$true] %s32_s13  ;;  %s35_s16 = int_to_ptr.hbm [resolvable:$true] %s34_s16 }
  0x78   :  { %v25_v1 = vpop.permute.xlu0 %24 }
  0x79   :  { %26 = vst [vmem:[#allocation5] sm:$0xff] %v25_v1 }
  0x7a   :  { %37 = dma.vmem_to_hbm [thread:$0]  %s33_s13, 128, %s35_s16, [#allocation4]  }
  0x7b   :  { %97 = dma.done.wait [#allocation4], 128  }
  0x7c   :  { %98 = vsyncadd [#allocation4], 4294967168 }
  0x7d   :  { %42 = vsyncpa [#allocation3], 1 }
  0x7e   :  { %43 = vsyncpa [#allocation4], 1 }

</bundles_post_ra>
